<compile_context>
chip_gen: v7x
topology: tpu7x:2x2x1
jax: 0.10.0
libtpu: 0.0.40
codegen_flags: <defaults>
</compile_context>

<pallas_src>
import jax
import jax.numpy as jnp
from jax import lax
from jax.experimental import pallas as pl
from jax.experimental.pallas import tpu as pltpu


OUT_W = 8  # output columns: 0=value, 1=action, 2=logp(action), 3=entropy, 4..7=pad


def _policy_heads_kernel(feat_ref, w_ref, b_ref, out_ref):
    # feat_ref: [tb, H]     (native feature dtype)
    # w_ref:    [H, A+1]    (categorical | critic weights, native dtype, resident)
    # b_ref:    [1, A+1]    (f32 biases, resident)
    # out_ref:  [tb, OUT_W] (f32)
    fused = jnp.dot(feat_ref[...], w_ref[...],
                    preferred_element_type=jnp.float32)       # MXU, f32 accum
    fused = fused + b_ref[...]                                 # f32 bias add (VPU)

    num_a = fused.shape[-1] - 1
    logits = fused[:, :num_a]                                  # [tb, A]
    value = fused[:, num_a:num_a + 1]                          # [tb, 1]

    # numerically-stable log-softmax
    m = jnp.max(logits, axis=-1, keepdims=True)                # [tb, 1]
    z = logits - m
    lse = jnp.log(jnp.sum(jnp.exp(z), axis=-1, keepdims=True))
    logp = z - lse                                             # [tb, A]
    probs = jnp.exp(logp)

    # mode(): first argmax index.  NOTE: exact-float tie-break matches
    # torch/jnp argmax because logits are accumulated in f32.
    tb = logits.shape[0]
    idx = lax.broadcasted_iota(jnp.int32, (tb, num_a), 1)
    action = jnp.min(jnp.where(logits == m, idx, num_a), axis=-1, keepdims=True)
    action_f = action.astype(jnp.float32)  # exact while num_actions < 2^24

    # log p(mode): z == 0 at the argmax, so log p = -lse (identical to gather)
    logp_action = -lse                                         # [tb, 1]

    # per-sample entropy
    ent = -jnp.sum(probs * logp, axis=-1, keepdims=True)       # [tb, 1]

    # narrow packed output: col 0=value, 1=action, 2=logp, 3=entropy, rest 0
    col = lax.broadcasted_iota(jnp.int32, out_ref.shape, 1)
    out_ref[...] = jnp.where(col == 0, value,
                    jnp.where(col == 1, action_f,
                     jnp.where(col == 2, logp_action,
                      jnp.where(col == 3, ent, 0.0))))


def _round_up(x, m):
    return (x + m - 1) // m * m


def _choose_tb(batch, hidden, feat_bytes):
    """Batch-tile size.

    Small (act-sized) batches: a single tile, rounded only to the 8-row sublane.
    Large (evaluate_actions-sized) batches: balanced 128-multiple tiles, >=2
    grid steps (so the 'parallel' axis shards across both v7x TensorCores),
    capped by a conservative VMEM budget that fits v5e's 16 MiB default scoped
    limit and v7x's 64 MiB physical VMEM with double buffering.  (Single-TC
    v5e/v6e pay only ~0.35 us per extra grid step, so the split is cheap there.)
    """
    if batch <= 512:
        return _round_up(max(batch, 1), 8)
    vmem_budget = 8 << 20
    per_row = 2 * (hidden * feat_bytes + OUT_W * 4)  # double-buffered in + out
    tb_cap = min(2048, max(128, (vmem_budget // per_row) // 128 * 128))
    n_tiles = max(2, pl.cdiv(batch, tb_cap))
    return min(tb_cap, _round_up(pl.cdiv(batch, n_tiles), 128))


@jax.jit
def policy_exploration_act(features, w_cat, b_cat, w_crit, b_crit):
    """Deterministic act() heads + entropy of the distribution.

    Returns (value[B,1] f32, action[B,1] i32, action_log_probs[B,1] f32,
             distribution_entropy scalar f32).
    """
    B, H = features.shape
    A = w_cat.shape[1]
    dtype = features.dtype

    # Fuse the two linear heads into one weight matrix; biases stay f32 and are
    # added after the f32-accumulated dot, so low-precision features do not
    # degrade the bias path.  (If full f32 critic precision is required with
    # bf16 features, keep w_aug in f32 instead of casting.)
    w_aug = jnp.concatenate([w_cat, w_crit], axis=1).astype(dtype)        # [H, A+1]
    b_aug = jnp.concatenate([b_cat, b_crit], axis=1).astype(jnp.float32)  # [1, A+1]

    tb = _choose_tb(B, H, jnp.dtype(dtype).itemsize)
    grid = (pl.cdiv(B, tb),)  # ragged last tile is masked by Pallas; no pad copy

    slab = pl.pallas_call(
        _policy_heads_kernel,
        out_shape=jax.ShapeDtypeStruct((B, OUT_W), jnp.float32),
        grid_spec=pltpu.PrefetchScalarGridSpec(
            num_scalar_prefetch=0,
            grid=grid,
            in_specs=[
                pl.BlockSpec((tb, H), lambda i: (i, 0)),
                pl.BlockSpec((H, A + 1), lambda i: (0, 0)),  # weights resident
                pl.BlockSpec((1, A + 1), lambda i: (0, 0)),  # f32 biases resident
            ],
            out_specs=pl.BlockSpec((tb, OUT_W), lambda i: (i, 0)),
        ),
        compiler_params=pltpu.CompilerParams(
            dimension_semantics=("parallel",)),
    )(features, w_aug, b_aug)

    value = slab[:, 0:1]
    action = slab[:, 1:2].astype(jnp.int32)
    action_log_probs = slab[:, 2:3]
    distribution_entropy = jnp.mean(slab[:, 3])  # = distribution.entropy().mean()
    return value, action, action_log_probs, distribution_entropy


def _orthogonal(key, rows, cols, gain=1.0, dtype=jnp.float32):
    """Deterministic orthogonal init (matches nn.init.orthogonal_ semantics)."""
    n = max(rows, cols)
    a = jax.random.normal(key, (n, n), dtype=jnp.float32)
    q, r = jnp.linalg.qr(a)
    q = q * jnp.sign(jnp.diag(r))
    return (gain * q[:rows, :cols]).astype(dtype)


if __name__ == "__main__":
    key = jax.random.PRNGKey(0)
    k_feat, k_wc, k_wv = jax.random.split(key, 3)

    B = 8          # batch
    H = 32         # net.output_size (hidden size)
    A = 4          # dim_actions

    # Synthetic "features" = output of the abstract backbone `net`.
    features = jax.random.normal(k_feat, (B, H), dtype=jnp.float32)

    # CategoricalNet linear: PyTorch weight [A, H] orthogonal gain=0.01, bias 0.
    w_cat = _orthogonal(k_wc, A, H, gain=0.01).T           # [H, A]
    b_cat = jnp.zeros((1, A), dtype=jnp.float32)

    # CriticHead linear: PyTorch weight [1, H] orthogonal (gain=1), bias 0.
    w_crit = _orthogonal(k_wv, 1, H, gain=1.0).T            # [H, 1]
    b_crit = jnp.zeros((1, 1), dtype=jnp.float32)

    value, action, action_log_probs, entropy = policy_exploration_act(
        features, w_cat, b_cat, w_crit, b_crit)
    jax.block_until_ready((value, action, action_log_probs, entropy))

    # Reference check in plain JAX (same math as torch Categorical + Linear).
    logits_ref = features @ w_cat + b_cat
    logp_ref = jax.nn.log_softmax(logits_ref, axis=-1)
    act_ref = jnp.argmax(logits_ref, axis=-1, keepdims=True).astype(jnp.int32)
    value_ref = features @ w_crit + b_crit
    lp_ref = jnp.take_along_axis(logp_ref, act_ref, axis=-1)
    ent_ref = jnp.mean(-jnp.sum(jnp.exp(logp_ref) * logp_ref, axis=-1))

    assert jnp.allclose(value, value_ref, atol=1e-5)
    assert jnp.array_equal(action, act_ref)
    assert jnp.allclose(action_log_probs, lp_ref, atol=1e-5)
    assert jnp.allclose(entropy, ent_ref, atol=1e-5)

    # TODO(synk): stochastic sampling path (distribution.sample()) would need
    # pltpu.prng_* Gumbel sampling; only the deterministic mode() path is done.
    # TODO(synk): map_reward_entropy = 0.5*sum(var_log) depends on the abstract
    # backbone's var_log output and is not part of the heads kernel.

    print("KERNEL_OK")
</pallas_src>

<mosaic_0001>
module attributes {stable_mosaic.version = 11 : i64} {
  func.func @_policy_heads_kernel(%arg0: i32, %arg1: memref<8x32xf32, #tpu.memory_space<vmem>>, %arg2: memref<32x5xf32, #tpu.memory_space<vmem>>, %arg3: memref<1x5xf32, #tpu.memory_space<vmem>>, %arg4: memref<8x8xf32, #tpu.memory_space<vmem>>) attributes {dimension_semantics = [#tpu.dimension_semantics<parallel>], iteration_bounds = array<i64: 1>, scalar_prefetch = 0 : i64, scratch_operands = 0 : i64, tpu.core_type = #tpu.core_type<tc>, window_params = [{transform_indices = @transform_0, window_bounds = array<i64: 8, 32>}, {pipeline_mode = #tpu.pipeline_mode<synchronous>, transform_indices = @transform_1, window_bounds = array<i64: 32, 5>}, {pipeline_mode = #tpu.pipeline_mode<synchronous>, transform_indices = @transform_2, window_bounds = array<i64: 1, 5>}, {transform_indices = @transform_3, window_bounds = array<i64: 8, 8>}]} {
    %c0 = arith.constant 0 : index
    %c0_0 = arith.constant 0 : index
    %0 = vector.load %arg1[%c0, %c0_0] : memref<8x32xf32, #tpu.memory_space<vmem>>, vector<8x32xf32>
    %c0_1 = arith.constant 0 : index
    %c0_2 = arith.constant 0 : index
    %1 = vector.load %arg2[%c0_1, %c0_2] : memref<32x5xf32, #tpu.memory_space<vmem>>, vector<32x5xf32>
    %cst = arith.constant dense<0.000000e+00> : vector<8x5xf32>
    %2 = tpu.matmul %0, %1, %cst {dimension_numbers = #tpu.dot_dimension_numbers<[1], [0], [0], [1], [0, 0, 1, 1], [], []>} : vector<8x32xf32>, vector<32x5xf32>, vector<8x5xf32> -> vector<8x5xf32>
    %c0_3 = arith.constant 0 : index
    %c0_4 = arith.constant 0 : index
    %3 = vector.load %arg3[%c0_3, %c0_4] : memref<1x5xf32, #tpu.memory_space<vmem>>, vector<1x5xf32>
    %4 = vector.broadcast %3 : vector<1x5xf32> to vector<8x5xf32>
    %5 = arith.addf %2, %4 : vector<8x5xf32>
    %6 = vector.extract_strided_slice %5 {offsets = [0, 0], sizes = [8, 4], strides = [1, 1]} : vector<8x5xf32> to vector<8x4xf32>
    %7 = vector.extract_strided_slice %5 {offsets = [0, 4], sizes = [8, 1], strides = [1, 1]} : vector<8x5xf32> to vector<8x1xf32>
    %cst_5 = arith.constant dense<0xFF800000> : vector<8xf32>
    %8 = vector.multi_reduction <maximumf>, %6, %cst_5 [1] : vector<8x4xf32> to vector<8xf32>
    %9 = vector.shape_cast %8 : vector<8xf32> to vector<8x1xf32>
    %10 = vector.broadcast %9 : vector<8x1xf32> to vector<8x4xf32>
    %11 = arith.subf %6, %10 : vector<8x4xf32>
    %12 = math.exp %11 : vector<8x4xf32>
    %cst_6 = arith.constant dense<0.000000e+00> : vector<8xf32>
    %13 = vector.multi_reduction <add>, %12, %cst_6 [1] : vector<8x4xf32> to vector<8xf32>
    %14 = vector.shape_cast %13 : vector<8xf32> to vector<8x1xf32>
    %15 = math.log %14 : vector<8x1xf32>
    %16 = vector.broadcast %15 : vector<8x1xf32> to vector<8x4xf32>
    %17 = arith.subf %11, %16 : vector<8x4xf32>
    %18 = math.exp %17 : vector<8x4xf32>
    %19 = tpu.iota {dimensions = array<i32: 1>} : vector<8x4xi32>
    %20 = vector.broadcast %9 : vector<8x1xf32> to vector<8x4xf32>
    %21 = arith.cmpf oeq, %6, %20 : vector<8x4xf32>
    %c4_i32 = arith.constant 4 : i32
    %22 = vector.broadcast %c4_i32 : i32 to vector<8x4xi32>
    %23 = arith.select %21, %19, %22 : vector<8x4xi1>, vector<8x4xi32>
    %cst_7 = arith.constant dense<2147483647> : vector<8xi32>
    %24 = vector.multi_reduction <minsi>, %23, %cst_7 [1] : vector<8x4xi32> to vector<8xi32>
    %25 = vector.shape_cast %24 : vector<8xi32> to vector<8x1xi32>
    %26 = arith.sitofp %25 : vector<8x1xi32> to vector<8x1xf32>
    %cst_8 = arith.constant 0.000000e+00 : f32
    %27 = vector.broadcast %cst_8 : f32 to vector<8x1xf32>
    %28 = arith.subf %27, %15 : vector<8x1xf32>
    %29 = arith.mulf %18, %17 : vector<8x4xf32>
    %cst_9 = arith.constant dense<0.000000e+00> : vector<8xf32>
    %30 = vector.multi_reduction <add>, %29, %cst_9 [1] : vector<8x4xf32> to vector<8xf32>
    %31 = vector.shape_cast %30 : vector<8xf32> to vector<8x1xf32>
    %cst_10 = arith.constant 0.000000e+00 : f32
    %32 = vector.broadcast %cst_10 : f32 to vector<8x1xf32>
    %33 = arith.subf %32, %31 : vector<8x1xf32>
    %34 = tpu.iota {dimensions = array<i32: 1>} : vector<8x8xi32>
    %c0_i32 = arith.constant 0 : i32
    %35 = vector.broadcast %c0_i32 : i32 to vector<8x8xi32>
    %36 = arith.cmpi eq, %34, %35 : vector<8x8xi32>
    %c1_i32 = arith.constant 1 : i32
    %37 = vector.broadcast %c1_i32 : i32 to vector<8x8xi32>
    %38 = arith.cmpi eq, %34, %37 : vector<8x8xi32>
    %c2_i32 = arith.constant 2 : i32
    %39 = vector.broadcast %c2_i32 : i32 to vector<8x8xi32>
    %40 = arith.cmpi eq, %34, %39 : vector<8x8xi32>
    %c3_i32 = arith.constant 3 : i32
    %41 = vector.broadcast %c3_i32 : i32 to vector<8x8xi32>
    %42 = arith.cmpi eq, %34, %41 : vector<8x8xi32>
    %cst_11 = arith.constant 0.000000e+00 : f32
    %43 = vector.shape_cast %33 : vector<8x1xf32> to vector<8x1xf32>
    %44 = vector.broadcast %43 : vector<8x1xf32> to vector<8x8xf32>
    %45 = vector.broadcast %cst_11 : f32 to vector<8x8xf32>
    %46 = arith.select %42, %44, %45 : vector<8x8xi1>, vector<8x8xf32>
    %47 = vector.shape_cast %28 : vector<8x1xf32> to vector<8x1xf32>
    %48 = vector.broadcast %47 : vector<8x1xf32> to vector<8x8xf32>
    %49 = arith.select %40, %48, %46 : vector<8x8xi1>, vector<8x8xf32>
    %50 = vector.shape_cast %26 : vector<8x1xf32> to vector<8x1xf32>
    %51 = vector.broadcast %50 : vector<8x1xf32> to vector<8x8xf32>
    %52 = arith.select %38, %51, %49 : vector<8x8xi1>, vector<8x8xf32>
    %53 = vector.shape_cast %7 : vector<8x1xf32> to vector<8x1xf32>
    %54 = vector.broadcast %53 : vector<8x1xf32> to vector<8x8xf32>
    %55 = arith.select %36, %54, %52 : vector<8x8xi1>, vector<8x8xf32>
    %c0_12 = arith.constant 0 : index
    %c0_13 = arith.constant 0 : index
    %56 = vector.load %arg4[%c0_12, %c0_13] : memref<8x8xf32, #tpu.memory_space<vmem>>, vector<8x8xf32>
    tpu.vector_store %arg4[%c0_12, %c0_13], %55 {strides = array<i32>} : memref<8x8xf32, #tpu.memory_space<vmem>>, vector<8x8xf32>,
    return
  }
  func.func @transform_0(%arg0: i32) -> (i32, i32) {
    %c0_i32 = arith.constant 0 : i32
    %c0_i32_0 = arith.constant 0 : i32
    return %arg0, %c0_i32 : i32, i32
  }
  func.func @transform_1(%arg0: i32) -> (i32, i32) {
    %c0_i32 = arith.constant 0 : i32
    %c0_i32_0 = arith.constant 0 : i32
    %c0_i32_1 = arith.constant 0 : i32
    return %c0_i32, %c0_i32_0 : i32, i32
  }
  func.func @transform_2(%arg0: i32) -> (i32, i32) {
    %c0_i32 = arith.constant 0 : i32
    %c0_i32_0 = arith.constant 0 : i32
    %c0_i32_1 = arith.constant 0 : i32
    return %c0_i32, %c0_i32_0 : i32, i32
  }
  func.func @transform_3(%arg0: i32) -> (i32, i32) {
    %c0_i32 = arith.constant 0 : i32
    %c0_i32_0 = arith.constant 0 : i32
    return %arg0, %c0_i32 : i32, i32
  }
}

</mosaic_0001>

<bundles_post_ra>
// kernel: policy_exploration_act.1
= control target key start
LH: loop header
LB: loop body
LE: loop exit
PB: predicated region body
PF: predicated region fallthrough
CT: control target
= control target key end

     0   :  { %v196_v0 = vmov 0.0|0.0   ;;  %vm197_vm0 = vmmov 0   ;;  %v198_v4 = vmov 0.0   ;;  %vm26_vm1 = vcmask 261120   ;;  %s245_s1 = inlined_call_operand.vmem [shape: f32[32,5], index: 1, kind: input, shape index: {}]   ;;  %s246_s0 = inlined_call_operand.vmem [shape: f32[8,32], index: 0, kind: input, shape index: {}]   ;;  %s247_s2 = inlined_call_operand.vmem [shape: f32[1,5], index: 2, kind: input, shape index: {}]   ;;  %s248_s3 = inlined_call_operand.vmem [shape: f32[8,8], index: 3, kind: output, shape index: {}]  }
   0x1   :  { %178 = vmatprep.subr.bf16.mxu0 %v196_v0  ;;  %v15_v1 = vld [vmem:[%s245_s1] sm:$0xff]  ;;  %v16_v2 = vld [vmem:[%s245_s1 + $0x8] sm:$0xff]  ;;  %v17_v3 = vld [vmem:[%s245_s1 + $0x10] sm:$0xff]  ;;  %175 = vmatprep.mubr.msk.f32.mxu0 %vm197_vm0, %v198_v4  ;;  %vm100_vm2 = vcmask 31744   ;;  %v115_v14 = vlaneseq  ;;  %v199_v25 = vmov 4   ;;  %vm154_vm9 = vcmask 64512  }
   0x2   :  { %v179_v5 = vpack.c.bf16 %v16_v2, %v15_v1  ;;  %v18_v6 = vld [vmem:[%s245_s1 + $0x18] sm:$0xff]  ;;  %v14_v8 = vld [vmem:[%s246_s0] sm:$0xff]  ;;  %188 = vset.pattern.permute.xlu1 %v199_v25  ;;  %189 = vset.pattern.permute.xlu0 %v199_v25 }
   0x3   :  { %v182_v7 = vpack.c.bf16 %v18_v6, %v17_v3  ;;  %v160_v9 = vld [vmem:[%s247_s2] ss:$0 sm:$0xff]  ;;  %v116_v15 = vand.u32 127, %v115_v14 }
   0x4   :  { %180 = vmatpush3.bf16.msra.mxu0 %v179_v5 }
   0x5   :  { %181 = vmatprep.subr.bf16.mxu0 %v196_v0  ;;  %vm144_vm5 = vcmp.eq.s32.totalorder %v116_v15, 3  ;;  %vm143_vm6 = vcmp.eq.s32.totalorder %v116_v15, 2  ;;  %vm142_vm7 = vcmp.eq.s32.totalorder %v116_v15, 1  ;;  %vm141_vm8 = vcmp.eq.s32.totalorder %v116_v15, 0 }
   0x8   :  { %183 = vmatpush3.bf16.msra.mxu0 %v182_v7 }
   0xb   :  { %176 = vmatmul.mubr.msk.f32.vlgmr.msra.gmra.mrb[0].mxu0 %vm26_vm1, %v14_v8 }
  0xde   :  { %v96_v10 = vpop.f32.mrb[0].mxu0 }
  0xdf   :  { %v97_v11 = vadd.f32 %v160_v9, %v96_v10  ;;  %v177_v12 = vpop.f32.mrb[1].mxu0 }
  0xe1   :  { %v101_v13 = vsel %vm100_vm2, %v97_v11, -inf }
  0xe2   :  { %102 = vmax.xlane.f32.xlu0 %v101_v13 }
 0x16f   :  { %v103_v16 = vpop.xlane.xlu0 %102 }
 0x170   :  { %v104_v17 = vsub.f32 %v97_v11, %v103_v16  ;;  %vm117_vm3 = vcmp.eq.f32.partialorder %v97_v11, %v103_v16 }
 0x171   :  { %v118_v18 = vsel %vm117_vm3, %v116_v15, 4 }
 0x172   :  { %v105_v19 = vmul.f32 1.442695, %v104_v17  ;;  %v119_v20 = vsel %vm100_vm2, %v118_v18, 2147483647 }
 0x173   :  { %v121_v21 = vshra.s32 %v119_v20, 16  ;;  %v120_v26 = vand.u32 65535, %v119_v20 }
 0x174   :  { %190 = vpow2.f32 %v105_v19 }
 0x175   :  { %v123_v22 = vcvt.s32.f32 %v121_v21  ;;  %v122_v28 = vcvt.s32.f32 %v120_v26 }
 0x177   :  { %124 = vmin.xlane.f32.xlu1 %v123_v22 }
 0x17e   :  { %v191_v23 = vpop.eup %190 }
 0x17f   :  { %v107_v24 = vsel %vm100_vm2, %v191_v23, 0.0 }
 0x180   :  { %108 = vadd.xlane.f32.xlu0 %v107_v24 }
 0x204   :  { %v125_v27 = vpop.xlane.xlu1 %124 }
 0x205   :  { %vm126_vm4 = vcmp.eq.f32.partialorder %v123_v22, %v125_v27  ;;  %v131_v39 = vcvt.f32.s32 %v125_v27 }
 0x206   :  { %v127_v29 = vsel %vm126_vm4, %v122_v28, inf }
 0x207   :  { %128 = vmin.xlane.f32.xlu1 %v127_v29  ;;  %v132_v41 = vshll.u32 %v131_v39, 16 }
 0x20d   :  { %v109_v30 = vpop.xlane.xlu0 %108 }
 0x20e   :  { %192 = vlog2.f32 %v109_v30 }
 0x218   :  { %v193_v31 = vpop.eup %192  ;;  %150 = vperm.xlu1 %188, %v97_v11  }
 0x219   :  { %v111_v32 = vmul.f32 0.6931472, %v193_v31 }
 0x21b   :  { %v112_v33 = vsub.f32 %v104_v17, %v111_v32  ;;  %v135_v45 = vsub.f32 0.0, %v111_v32 }
 0x21d   :  { %v113_v34 = vmul.f32 1.442695, %v112_v33 }
 0x21f   :  { %194 = vpow2.f32 %v113_v34 }
 0x229   :  { %v195_v35 = vpop.eup %194 }
 0x22a   :  { %v136_v36 = vmul.f32 %v195_v35, %v112_v33 }
 0x22c   :  { %v137_v37 = vsel %vm100_vm2, %v136_v36, 0.0 }
 0x22d   :  { %138 = vadd.xlane.f32.xlu0 %v137_v37 }
 0x294   :  { %v129_v38 = vpop.xlane.xlu1 %128 }
 0x295   :  { %v130_v40 = vcvt.f32.s32 %v129_v38 }
 0x297   :  { %v133_v42 = vadd.s32 %v132_v41, %v130_v40 }
 0x298   :  { %v151_v49 = vpop.permute.xlu1 %150 }
 0x299   :  { %v134_v46 = vcvt.s32.f32 %v133_v42 }
 0x2ba   :  { %v139_v43 = vpop.xlane.xlu0 %138 }
 0x2bb   :  { %v140_v44 = vsub.f32 0.0, %v139_v43 }
 0x2bd   :  { %v145_v47 = vsel %vm144_vm5, %v140_v44, 0.0 }
 0x2be   :  { %v146_v48 = vsel %vm143_vm6, %v135_v45, %v145_v47 }
 0x2bf   :  { %v147_v50 = vsel %vm142_vm7, %v134_v46, %v146_v48 }
 0x2c0   :  { %v153_v51 = vsel %vm141_vm8, %v151_v49, %v147_v50 }
 0x2c1   :  { %155 = vst.msk [vmem:[%s248_s3] sm:$0xff] %vm154_vm9, %v153_v51 }

</bundles_post_ra>
